<compile_context>
chip_gen: v7x
topology: tpu7x:2x2x1
jax: 0.10.0
libtpu: 0.0.40
codegen_flags: <defaults>
</compile_context>

<pallas_src>
from functools import partial

import numpy as np
import jax
import jax.numpy as jnp
from jax.experimental import pallas as pl
from jax.experimental.pallas import tpu as pltpu


def stage1_targets_kernel(tok_ref, ce_ref, out_ref):
    """One batch-block per grid step.

    tok_ref : (Bb, Q, 1) int32  caption-token index per query (-1 => zero row)
    ce_ref  : (Bb, T, D)        class embeddings (already in output dtype if
                                narrower than the source dtype)
    out_ref : (Bb, Q, D)        gathered targets
    """
    Bb, Q, _ = tok_ref.shape
    T = ce_ref.shape[1]

    tok = tok_ref[...]                                          # (Bb, Q, 1)
    t_ids = jax.lax.broadcasted_iota(jnp.int32, (Bb, Q, T), 2)  # (Bb, Q, T)
    # -1 (and any out-of-range index) matches no column -> all-zero one-hot
    # row -> zero target (matches the `if cls == -1: continue` branch).
    # A 0/1 one-hot matmul is exact even in bf16, so operands stay in the
    # embeddings' dtype and accumulate in f32 on the MXU.
    onehot = (t_ids == tok).astype(ce_ref.dtype)                # (Bb, Q, T)

    # TODO(synk): for long captions (large T, T >> Q) replace this K=T-starved
    # one-hot matmul with a scalar-prefetch DMA row gather
    # (PrefetchScalarGridSpec + pl.Element(1) on the T axis, idx != -1 mask).
    out_ref[...] = jnp.einsum(
        "bqt,btd->bqd", onehot, ce_ref[...],
        preferred_element_type=jnp.float32,
    ).astype(out_ref.dtype)


def _vmem_capacity_bytes(default=64 << 20):
    """Physical VMEM per core; conservative (v7x-like) fallback."""
    try:
        info = pltpu.get_tpu_info()
        cap = getattr(info, "vmem_capacity_bytes", None)
        if cap:
            return int(cap)
    except Exception:
        pass
    return default


def build_targets(token_idx, class_embeds, out_dtype=jnp.float32,
                  vmem_budget_bytes=None):
    """targets[b, q] = class_embeds[b, token_idx[b, q]] (or 0 when idx == -1)."""
    B, Q = token_idx.shape
    _, T, D = class_embeds.shape
    out_dtype = jnp.dtype(out_dtype)

    # Cast-then-gather == gather-then-cast for a 0/1 one-hot, so when the
    # output dtype is narrower (bf16/f16) cast the embeddings up-front:
    # halves the dominant HBM read and the ce VMEM block.
    ce = class_embeds
    if out_dtype.itemsize < jnp.dtype(ce.dtype).itemsize:
        ce = ce.astype(out_dtype)

    tok = token_idx.reshape(B, Q, 1).astype(jnp.int32)

    vmem_cap = _vmem_capacity_bytes()
    if vmem_budget_bytes is None:
        # v7x has 64 MiB VMEM (and 2 TCs sharing the chip); v5e/v6e have 128.
        vmem_budget_bytes = (24 << 20) if vmem_cap <= (64 << 20) else (48 << 20)

    ce_bytes = jnp.dtype(ce.dtype).itemsize
    out_bytes = out_dtype.itemsize
    # Per-batch-element VMEM: double-buffered I/O blocks (tok lane-pads to 128)
    # plus in-kernel intermediates: int32 iota, one-hot, f32 einsum result.
    per_b = (2 * (T * D * ce_bytes + Q * D * out_bytes + Q * 128 * 4)
             + Q * T * (4 + ce_bytes) + Q * D * 4)
    block_b = int(max(1, min(B, vmem_budget_bytes // max(per_b, 1))))
    # Keep >= 2 grid steps whenever B allows: the next ce block then streams
    # in under the current matmul, and the "parallel" batch axis can shard
    # across v7x's two TensorCores.
    if B >= 2:
        block_b = min(block_b, -(-B // 2))
    grid_b = pl.cdiv(B, block_b)

    block_vmem = block_b * per_b
    vmem_limit = int(min(max(32 << 20, block_vmem + (4 << 20)),
                         max(vmem_cap - (8 << 20), 32 << 20)))

    # With a single grid step there is nothing to pipeline; drop to single
    # buffering so the one block can be as large as possible.
    pipeline_mode = pl.Buffered(1) if grid_b == 1 else None

    def spec(shape, imap):
        if pipeline_mode is None:
            return pl.BlockSpec(shape, imap)
        return pl.BlockSpec(shape, imap, pipeline_mode=pipeline_mode)

    cost = pl.CostEstimate(
        flops=2 * B * Q * T * D,
        transcendentals=0,
        bytes_accessed=B * (T * D * ce_bytes + Q * D * out_bytes + Q * 4),
    )

    # TODO(synk): at DETR-scale Q, move token_idx to SMEM / scalar prefetch
    # together with the DMA-gather variant; as a tiny VMEM block it is fine.
    return pl.pallas_call(
        stage1_targets_kernel,
        out_shape=jax.ShapeDtypeStruct((B, Q, D), out_dtype),
        grid=(grid_b,),
        in_specs=[
            spec((block_b, Q, 1), lambda b: (b, 0, 0)),
            spec((block_b, T, D), lambda b: (b, 0, 0)),
        ],
        out_specs=spec((block_b, Q, D), lambda b: (b, 0, 0)),
        compiler_params=pltpu.CompilerParams(
            dimension_semantics=("parallel",),
            vmem_limit_bytes=vmem_limit),
        cost_estimate=cost,
    )(tok, ce)


def compute_token_idx(gt_labels):
    """Device-side analogue of the Python class->caption-token-index dicts.

    For each batch row, classes are enumerated in sorted-unique order (the same
    order the captions / class_embeds are built in), so
      token_idx[b, q] = rank of gt_labels[b, q] among the unique valid classes
                        of row b, or -1 when gt_labels[b, q] == -1.
    """
    labels = gt_labels.astype(jnp.int32)                        # (B, Q)
    B, Q = labels.shape
    valid = labels != -1
    big = jnp.int32(2 ** 31 - 1)
    masked = jnp.where(valid, labels, big)
    svals = jnp.sort(masked, axis=1)                            # (B, Q)
    is_new = jnp.concatenate(
        [jnp.ones_like(svals[:, :1], dtype=bool),
         svals[:, 1:] != svals[:, :-1]], axis=1)                # (B, Q)
    # Rank of the unique value sitting at each sorted position.
    uniq_rank = jnp.cumsum(is_new.astype(jnp.int32), axis=1) - 1
    # Per-row searchsorted (O(Q log Q)); every valid label is present in its
    # own row, so 'left' finds its first occurrence.
    pos = jax.vmap(lambda s, l: jnp.searchsorted(s, l, side="left"))(
        svals, labels)
    pos = jnp.minimum(pos, Q - 1)
    rank = jnp.take_along_axis(uniq_rank, pos, axis=1)
    return jnp.where(valid, rank, -1).astype(jnp.int32)


@partial(jax.jit, static_argnames=("out_dtype",))
def _stage1_targets(gt_labels, class_embeds, out_dtype):
    token_idx = compute_token_idx(gt_labels)
    return build_targets(token_idx, class_embeds, out_dtype)


def stage1_forward(kformer_output, class_embeds, gt_labels, captions):
    """JAX/Pallas analogue of Stage1.forward's output construction.

    kformer_output : [B, Q, D]  (from aqua -- external, synthesized here)
    class_embeds   : [B, T, D]  (from PostProcessLogit -- external, synthesized)
    gt_labels      : [B, Q] int array, -1 == no class
    """
    # TODO(synk): detr/image/text backbones, aqua, PostProcessLogit and the
    # COCO-category caption strings are external frozen modules / host-side
    # string work; their outputs are taken as inputs here.
    gt_labels = jnp.asarray(gt_labels, dtype=jnp.int32)
    targets = _stage1_targets(gt_labels, class_embeds, kformer_output.dtype)
    return {
        "kformer_output": kformer_output,
        "targets": targets,
        "gt_labels": gt_labels,
        "captions": captions,
    }


if __name__ == "__main__":
    # Small deterministic shapes: B=2 batch, Q=8 queries, T=8 caption tokens,
    # D=32 hidden.
    B, Q, T, D = 2, 8, 8, 32
    key = jax.random.PRNGKey(0)
    k1, k2 = jax.random.split(key, 2)

    # Synthetic stand-ins for the frozen external modules.
    kformer_output = jax.random.normal(k1, (B, Q, D), dtype=jnp.float32)
    class_embeds = jax.random.normal(k2, (B, T, D), dtype=jnp.float32)

    # gt_labels: COCO-like class ids per query, -1 means "no object".
    rng = np.random.default_rng(0)
    gt_labels = rng.choice(np.array([-1, 3, 7, 12, 21], dtype=np.int32),
                           size=(B, Q))

    captions = ["cat. dog.", "person. car."]
    out = stage1_forward(kformer_output, class_embeds, gt_labels, captions)
    targets = jax.block_until_ready(out["targets"])

    # Reference (mirrors the PyTorch double loop).
    ce_np = np.asarray(class_embeds)
    ref = np.zeros((B, Q, D), dtype=np.float32)
    for b in range(B):
        gt_class = sorted(set(int(c) for c in gt_labels[b] if c != -1))
        c2t = {c: i for i, c in enumerate(gt_class)}
        for q in range(Q):
            cls = int(gt_labels[b, q])
            if cls == -1:
                continue
            ref[b, q] = ce_np[b, c2t[cls]]

    np.testing.assert_allclose(np.asarray(targets), ref, rtol=1e-5, atol=1e-5)

    # bf16 output path: class_embeds are cast before the call; the 0/1 gather
    # is then bit-exact vs. cast-then-gather.
    out_bf16 = stage1_forward(kformer_output.astype(jnp.bfloat16),
                              class_embeds, gt_labels, captions)
    tgt_bf16 = jax.block_until_ready(out_bf16["targets"])
    ref_bf16 = np.asarray(jnp.asarray(ref).astype(jnp.bfloat16)).astype(np.float32)
    np.testing.assert_array_equal(np.asarray(tgt_bf16).astype(np.float32),
                                  ref_bf16)

    print("KERNEL_OK")
</pallas_src>

<mosaic_0001>
module attributes {stable_mosaic.version = 11 : i64} {
  func.func @stage1_targets_kernel(%arg0: i32, %arg1: memref<1x8x1xi32, #tpu.memory_space<vmem>>, %arg2: memref<1x8x32xf32, #tpu.memory_space<vmem>>, %arg3: memref<1x8x32xf32, #tpu.memory_space<vmem>>) attributes {dimension_semantics = [#tpu.dimension_semantics<parallel>], iteration_bounds = array<i64: 2>, scalar_prefetch = 0 : i64, scratch_operands = 0 : i64, tpu.core_type = #tpu.core_type<tc>, window_params = [{transform_indices = @transform_0, window_bounds = array<i64: 1, 8, 1>}, {transform_indices = @transform_1, window_bounds = array<i64: 1, 8, 32>}, {transform_indices = @transform_2, window_bounds = array<i64: 1, 8, 32>}]} {
    %c0 = arith.constant 0 : index
    %c0_0 = arith.constant 0 : index
    %c0_1 = arith.constant 0 : index
    %0 = vector.load %arg1[%c0, %c0_0, %c0_1] : memref<1x8x1xi32, #tpu.memory_space<vmem>>, vector<1x8x1xi32>
    %1 = tpu.iota {dimensions = array<i32: 2>} : vector<1x8x8xi32>
    %2 = vector.broadcast %0 : vector<1x8x1xi32> to vector<1x8x8xi32>
    %3 = arith.cmpi eq, %1, %2 : vector<1x8x8xi32>
    %4 = arith.extui %3 : vector<1x8x8xi1> to vector<1x8x8xi32>
    %5 = arith.sitofp %4 : vector<1x8x8xi32> to vector<1x8x8xf32>
    %c0_2 = arith.constant 0 : index
    %c0_3 = arith.constant 0 : index
    %c0_4 = arith.constant 0 : index
    %6 = vector.load %arg2[%c0_2, %c0_3, %c0_4] : memref<1x8x32xf32, #tpu.memory_space<vmem>>, vector<1x8x32xf32>
    "tpu.trace_start"() <{level = 10 : i32, message = "bqt,btd->bqd"}> : () -> ()
    %cst = arith.constant dense<0.000000e+00> : vector<1x8x32xf32>
    %7 = tpu.matmul %5, %6, %cst {dimension_numbers = #tpu.dot_dimension_numbers<[2], [1], [1], [2], [0, 0, 0, 1, 1, 2], [0], [0]>} : vector<1x8x8xf32>, vector<1x8x32xf32>, vector<1x8x32xf32> -> vector<1x8x32xf32>
    "tpu.trace_stop"() : () -> ()
    %c0_5 = arith.constant 0 : index
    %c0_6 = arith.constant 0 : index
    %c0_7 = arith.constant 0 : index
    %8 = vector.load %arg3[%c0_5, %c0_6, %c0_7] : memref<1x8x32xf32, #tpu.memory_space<vmem>>, vector<1x8x32xf32>
    tpu.vector_store %arg3[%c0_5, %c0_6, %c0_7], %7 {strides = array<i32>} : memref<1x8x32xf32, #tpu.memory_space<vmem>>, vector<1x8x32xf32>,
    return
  }
  func.func @transform_0(%arg0: i32) -> (i32, i32, i32) {
    %c0_i32 = arith.constant 0 : i32
    %c0_i32_0 = arith.constant 0 : i32
    %c0_i32_1 = arith.constant 0 : i32
    return %arg0, %c0_i32, %c0_i32_0 : i32, i32, i32
  }
  func.func @transform_1(%arg0: i32) -> (i32, i32, i32) {
    %c0_i32 = arith.constant 0 : i32
    %c0_i32_0 = arith.constant 0 : i32
    %c0_i32_1 = arith.constant 0 : i32
    return %arg0, %c0_i32, %c0_i32_0 : i32, i32, i32
  }
  func.func @transform_2(%arg0: i32) -> (i32, i32, i32) {
    %c0_i32 = arith.constant 0 : i32
    %c0_i32_0 = arith.constant 0 : i32
    %c0_i32_1 = arith.constant 0 : i32
    return %arg0, %c0_i32, %c0_i32_0 : i32, i32, i32
  }
}

</mosaic_0001>

<bundles_post_ra>
// kernel: custom-call.5
= control target key start
LH: loop header
LB: loop body
LE: loop exit
PB: predicated region body
PF: predicated region fallthrough
CT: control target
= control target key end

     0   :  { %s6_s0 = inlined_call_operand.vmem [shape: u32[2,8], index: 0, kind: output, shape index: {}]  }

// kernel: squeeze.7
= control target key start
LH: loop header
LB: loop body
LE: loop exit
PB: predicated region body
PF: predicated region fallthrough
CT: control target
= control target key end

     0   :  { %vm7_vm0 = vcmask 64512   ;;  %s39_s0 = inlined_call_operand.vmem [shape: s32[16], index: 0, kind: input, shape index: {}]   ;;  %s40_s1 = inlined_call_operand.vmem [shape: s32[2,8], index: 1, kind: output, shape index: {}]  }
   0x1   :  { %v4_v0 = vld [vmem:[%s39_s0] sm:$0x1]  ;;  %s22_s0 = smov 120  }
   0x2   :  { %5 = vst [vmem:[#allocation1] sm:$0x1] %v4_v0 }
   0x9   :  { %v9_v1 = vld [vmem:[#allocation1] sm:$0x1]  }
   0xa   :  { %v6_v2 = vld [vmem:[#allocation1] sm:$0x1]   ;;  %10 = vrot.lane.b32.xlu0 %v9_v1, %s22_s0 }
   0xb   :  { %8 = vst.msk [vmem:[#allocation0] sm:$0x1] %vm7_vm0, %v6_v2  }
  0x7c   :  { %v11_v3 = vpop.permute.xlu0 %10  }
  0x7d   :  { %14 = vst.msk [vmem:[#allocation0 + $0x1] sm:$0x1] %vm7_vm0, %v11_v3  }
  0x84   :  { %v18_v4 = vld [vmem:[#allocation0] sm:$0x3] }
  0x85   :  { %20 = vst [vmem:[%s40_s1] sm:$0x3] %v18_v4 }

// kernel: _stage1_targets.1
= control target key start
LH: loop header
LB: loop body
LE: loop exit
PB: predicated region body
PF: predicated region fallthrough
CT: control target
= control target key end

     0   :  { %7 = vsyncpa [#allocation3], 0  ;;  %s576_s0 = inlined_call_operand.vmem [shape: s32[2,8,1], index: 0, kind: input, shape index: {}]   ;;  %s577_s1 = inlined_call_operand.vmem [shape: f32[2,8,32], index: 1, kind: input, shape index: {}]   ;;  %s578_s2 = inlined_call_operand.hbm [shape: f32[2,8,32], index: 2, kind: output, shape index: {}]  }
   0x1   :  { %9 = vsyncpa [#allocation3 + $0x1], 0  ;;  %s473_s9 = smov 0   ;;  %s475_s10 = smov 0  }
   0x2   :  { %s477_s11 = smov 0   ;;  %s479_s12 = smov 0  }
   0x3 LB: > { %s494_s13 = sadd.s32 4294967295, %s452_s12   ;;  %s327_s14 = sadd.s32 4294967294, %s452_s12   ;;  %s452_s12 = sphi %s479_s12, %s584_s12   ;;  %s448_s11 = sphi %s477_s11, %s583_s11   ;;  %s444_s10 = sphi %s475_s10, %s582_s10   ;;  %s440_s9 = sphi %s473_s9, %s581_s9  }
   0x4   : > { %s498_s15 = sadd.s32 1, %s452_s12   ;;  %s74_s16 = sadd.s32 1, %s448_s11 }
   0x5   : > { %s71_s17 = ssub.s32 %s452_s12, %s498_s15  ;;  %p84_p0 = scmp.ne.s32.totalorder %s448_s11, %s444_s10 }
   0x6   : > { %p72_p1 = scmp.eq.s32.totalorder %s71_s17, 0  ;;  %p85_p2 = scmp.eq.s32.totalorder %s494_s13, 1 }
   0x7   : > { %p90_p3 = scmp.ne.s32.totalorder %s444_s10, %s440_s9  ;;  %p91_p4 = scmp.eq.s32.totalorder %s327_s14, 1 }
   0x8   : > { %s509_s18 = scalar_select %p72_p1, %s448_s11, %s74_s16  }
   0x9   : > { %p511_p5 = por %p85_p2, %p84_p0  ;;  %p515_p6 = por %p91_p4, %p90_p3 }
   0xa   : > { %p330_p7 = scmp.ge.s32.totalorder %s452_s12, 1  ;;  %p123_p8 = scmp.lt.s32.totalorder %s452_s12, 3 }
   0xc   : > { %p124_p9 = pnand %p330_p7, %p123_p8 }
   0xd   : > { %p148_p10 = scmp.lt.s32.totalorder (!%p124_p9), %s494_s13, 1  ;;  %v454_v0 = vmov (!%p124_p9), 0   ;;  %v455_v1 = vmov (!%p124_p9), 0.0   ;;  %vm456_vm0 = vmmov (!%p124_p9), 0   ;;  %v157_v4 = vlaneseq (!%p124_p9)  ;;  %s145_s29 = sand.u32 (!%p124_p9), 1, %s444_s10  }
   0xe   : > { %127 = sbr.rel (%p124_p9) target bundleno = 382 (0x17e), region = 28  ;;  %389 = vset.pattern.permute.xlu0 (!%p124_p9), %v454_v0  ;;  %342 = vmatprep.subr.mxu0 (!%p124_p9), %v455_v1  ;;  %vm166_vm1 = vcmask (!%p124_p9), 64512   ;;  %s331_s30 = sshll.u32 (!%p124_p9), %s145_s29, 3  ;;  %vm240_vm3 = vcmask (!%p124_p9), 261120  }
   0xf   : > { %344 = vmatprep.mubr.msk.f32.mxu0 (!%p124_p9), %vm456_vm0, %v455_v1  ;;  %v158_v5 = vand.u32 (!%p124_p9), 127, %v157_v4  ;;  %s337_s3 = sshll.u32 (!%p124_p9), %s494_s13, 7  ;;  %s147_s4 = scalar_lea.vmem (!%p124_p9), [#allocation2], %s331_s30 }
  0x10   : > { %s256_s5 = sshll.u32 (!%p124_p9), %s147_s4, 4  ;;  %s534_s8 = scalar_lea.hbm (!%p124_p9), %s578_s2, %s337_s3  ;;  %s536_s5 = int_to_ptr.vmem [resolvable:$true] %s256_s5 }
  0x11   : > { %s243_s14 = scalar_lea.sflag (!%p124_p9), [#allocation3], %s145_s29  ;;  %s390_s16 = scalar_lea.vmem (!%p124_p9), %s536_s5, 128 }
  0x12   : > { %p391_p11 = scmp.ne.s32.totalorder (!%p124_p9), %s536_s5, %s390_s16 }
  0x14   : > { %p392_p12 = pnand (!%p124_p9), %p391_p11, %p511_p5 }
  0x15   : > { %s149_s21 = scalar_select %p148_p10, %s494_s13, 1 }
  0x16   : > { %p393_p13 = pneg %p392_p12  ;;  %s457_s13 = smov [#allocation2]  }
  0x17   : > { %s332_s22 = sshll.u32 %s149_s21, 3  ;;  %s394_s17 = sshll.u32 %s457_s13, 4  ;;  %s395_s17 = int_to_ptr.vmem [resolvable:$false] %s394_s17 }
  0x18   : > { %s151_s25 = scalar_lea.vmem %s576_s0, %s332_s22  ;;  %s155_s28 = scalar_lea.vmem %s577_s1, %s332_s22 }
  0x19   : > { %v156_v2 = vld [vmem:[%s151_s25] sm:$0xff]  ;;  %s396_s21 = scalar_lea.vmem %s395_s17, 256  ;;  %p397_p0 = scmp.lt.s32.totalorder %s536_s5, %s395_s17 }
  0x1a   : > { %160 = vperm.xlu0 %389, %v156_v2   ;;  %v165_v3 = vld [vmem:[%s155_s28] sm:$0xff]  ;;  %p398_p1 = scmp.lt.s32.totalorder %s396_s21, %s390_s16 }
  0x1b   : > { %343 = vmatpush3.msra.mxu0 %v165_v3 }
  0x1c   : > { %p399_p2 = por %p398_p1, %p397_p0 }
  0x1e   : > { %p400_p3 = pnand %p399_p2, %p393_p13 }
  0x99   : > { %v161_v6 = vpop.permute.xlu0 %160 }
  0x9a   : > { %vm162_vm2 = vcmp.eq.s32.totalorder %v158_v5, %v161_v6 }
  0x9b   : > { %v334_v7 = vsel %vm162_vm2, 1.0, %v455_v1 }
  0x9c   : > { %345 = vmatmul.mubr.msk.f32.vlgmr.msra.gmra.mrb[0].mxu0 %vm166_vm1, %v334_v7 }
 0x16f   : > { %v236_v8 = vpop.f32.mrb[0].mxu0 }
 0x170   : > { %241 = vst.msk [vmem:[%s147_s4] sm:$0xff] %vm240_vm3, %v236_v8  ;;  %v346_v9 = vpop.f32.mrb[1].mxu0 }
 0x171   : > { %403 = shalt.err (!%p400_p3)
}
 0x172   : > { %s404_s22 = scalar_lea.hbm %s534_s8, 128  ;;  %s408_s25 = scalar_lea.hbm %s578_s2, 256 }
 0x173   : > { %p405_p4 = scmp.ne.s32.totalorder %s534_s8, %s404_s22  ;;  %p409_p9 = scmp.lt.u32.totalorder %s534_s8, %s578_s2 }
 0x174   : > { %p410_p10 = scmp.lt.u32.totalorder %s408_s25, %s404_s22  ;;  %p412_p12 = scmp.lt.u32.totalorder %s404_s22, %s534_s8 }
 0x175   : > { %p406_p7 = pnand %p405_p4, %p511_p5 }
 0x176   : > { %p411_p11 = por %p410_p10, %p409_p9 }
 0x177   : > { %p407_p8 = pneg %p406_p7 }
 0x178   : > { %p413_p13 = por %p412_p12, %p411_p11 }
 0x17a   : > { %p414_p0 = pnand %p413_p13, %p407_p8 }
 0x17c   : > { %417 = shalt.err (!%p414_p0)
}
 0x17d   : > { %347 = dma.vmem_to_hbm [thread:$0]  (%p511_p5), %s536_s5, 128, %s534_s8, %s243_s14  }
 0x17e PF: > { %p353_p1 = scmp.ge.s32.totalorder %s452_s12, 2  ;;  %s268_s28 = sand.u32 1, %s440_s9  }
 0x17f   : > { %s269_s29 = scalar_lea.sflag [#allocation3], %s268_s28 }
 0x180   : > { %p350_p2 = pnand %p353_p1, %p515_p6 }
 0x182   : > { %435 = dma.done.wait (!%p350_p2), %s269_s29, 128  }
 0x183   : > { %437 = vsyncadd (!%p350_p2), %s269_s29, 4294967168  ;;  %p12_p3 = scmp.ge.s32.totalorder %s498_s15, 4   ;;  %s581_s9 = smov %s444_s10 }
 0x184   : > { %s582_s10 = smov %s448_s11  ;;  %s583_s11 = smov %s509_s18 }
 0x185   : > { %s584_s12 = smov %s498_s15  ;;  %14 = sbr.rel (!%p12_p3) target bundleno = 3 (0x3), region = 66 }
 0x18c   :  { %274 = vsyncpa [#allocation3], 1 }
 0x18d   :  { %276 = vsyncpa [#allocation3 + $0x1], 1 }

</bundles_post_ra>
